<compile_context>
chip_gen: v5e
topology: v5e:2x2
jax: 0.10.0
libtpu: 0.0.40
codegen_flags: <defaults>
</compile_context>

<pallas_src>
import functools

import jax
import jax.numpy as jnp
from jax.experimental import pallas as pl
from jax.experimental.pallas import tpu as pltpu

# TODO(synk): the pretrained T5 encoder (self.pretrained_model.encoder) has no clean
# single-kernel Pallas equivalent here; its output `last_hidden_state` is the input.

_SQRT_2_OVER_PI = 0.7978845608028654
_INV_SQRT_2 = 0.7071067811865476


def _round_up(x, m):
    return (x + m - 1) // m * m


def _gelu(x, approx):
    if approx:
        # tanh-approximate GELU: transcendental goes to the EUP (own VLIW slot).
        return 0.5 * x * (1.0 + jnp.tanh(_SQRT_2_OVER_PI * (x + 0.044715 * (x * x * x))))
    # exact erf formulation (torch.nn.GELU() default) — VALU polynomial.
    return 0.5 * x * (1.0 + jax.lax.erf(x * _INV_SQRT_2))


def _head_kernel(scal_ref,                      # SMEM (5,): [sig(a), 1-sig(a), b1, b2, b3]
                 x_ref,                         # (tm, H) bf16  CLS-token activations
                 wh_ref, bh_ref,                # hidden Linear            (bf16 / f32)
                 wm1_ref, bm1_ref,              # merged [wc1@wi1a | wc1_pad]
                 wi1b_ref, bi1b_ref,            # increase_dimensions_1 second Linear
                 wm2_ref, bm2_ref,              # merged [wc2@wi2a | wc2_pad]
                 wi2b_ref, bi2b_ref,            # increase_dimensions_2 second Linear
                 wc3_ref, bc3_ref,              # classifier_level_3, padded
                 out_ref,                       # (tm, np1+np2+np3) f32 concatenated logits
                 *, approx_gelu):
    f32 = jnp.float32
    bf16 = jnp.bfloat16

    alpha = scal_ref[0]
    one_minus_alpha = scal_ref[1]
    beta_1 = scal_ref[2]
    beta_2 = scal_ref[3]
    beta_3 = scal_ref[4]

    hh = wi1b_ref.shape[0]                 # H // 2
    np1 = wm1_ref.shape[1] - hh
    np2 = wm2_ref.shape[1] - hh
    np3 = wc3_ref.shape[1]

    x = x_ref[...]                         # already bf16 (cast once in glue)

    # intermediate_output = dropout(hidden(x))   (dropout = identity, eval mode)
    h = jnp.dot(x, wh_ref[...], preferred_element_type=f32) + bh_ref[...]
    hb = h.astype(bf16)

    # One MXU pass for branch 1: [t1-preact | output_1]
    m1 = jnp.dot(hb, wm1_ref[...], preferred_element_type=f32) + bm1_ref[...]
    t1 = _gelu(m1[:, :hh], approx_gelu)
    o1 = m1[:, hh:hh + np1]                                   # classifier_level_1
    inc1 = _gelu(jnp.dot(t1.astype(bf16), wi1b_ref[...],
                         preferred_element_type=f32) + bi1b_ref[...], approx_gelu)

    # combined_input_2 = alpha * inc1 + (1 - alpha) * h
    c2 = alpha * inc1 + one_minus_alpha * h
    c2b = c2.astype(bf16)

    # One MXU pass for branch 2: [t2-preact | output_2]
    m2 = jnp.dot(c2b, wm2_ref[...], preferred_element_type=f32) + bm2_ref[...]
    t2 = _gelu(m2[:, :hh], approx_gelu)
    o2 = m2[:, hh:hh + np2]                                   # classifier_level_2
    inc2 = _gelu(jnp.dot(t2.astype(bf16), wi2b_ref[...],
                         preferred_element_type=f32) + bi2b_ref[...], approx_gelu)

    # combined_input_3 = beta_1 * inc1 + beta_2 * inc2 + beta_3 * h
    c3 = beta_1 * inc1 + beta_2 * inc2 + beta_3 * h
    o3 = jnp.dot(c3.astype(bf16), wc3_ref[...], preferred_element_type=f32) + bc3_ref[...]

    # Lane-dense concatenated store (offsets/widths are multiples of 128).
    out_ref[:, 0:np1] = o1
    out_ref[:, np1:np1 + np2] = o2
    out_ref[:, np1 + np2:np1 + np2 + np3] = o3


def multi_iddr_head(last_hidden_state, params, *, tm_max=256,
                    approx_gelu=True, single_buffer_weights=False):
    """Forward pass of the classifier head. Returns dict of logits.

    tm_max:  raise to 512 on v5e/v6e for very large B (128 MiB VMEM); keep 256 on v7x.
    approx_gelu: tanh-approx GELU (EUP) vs exact erf (VALU, matches torch bit-closer).
    single_buffer_weights: pl.Buffered(1) on the resident weights (v7x VMEM headroom).
    """
    B, _, H = last_hidden_state.shape
    Hh = H // 2
    n1 = params["wc1"].shape[1]
    n2 = params["wc2"].shape[1]
    n3 = params["wc3"].shape[1]
    np1, np2, np3 = (_round_up(n, 128) for n in (n1, n2, n3))
    n_out = np1 + np2 + np3

    f32 = jnp.float32
    bf16 = jnp.bfloat16

    # CLS-token slice; stream x as bf16.
    x = last_hidden_state[:, 0, :].astype(bf16)                     # (B, H)

    # Tile size: multiple of 16 (bf16 sublane tiling); ~ceil(B/2) so the grid has
    # >= 2 steps whenever B allows -> both v7x TensorCores get sharded work.
    tm = max(16, min(tm_max, _round_up(-(-B // 2), 16)))
    b_pad = _round_up(B, tm)
    if b_pad != B:
        x = jnp.pad(x, ((0, b_pad - B), (0, 0)))

    # Scalar parameter transforms -> SMEM pack [sig(a), 1-sig(a), softmax(betas)].
    alpha = jax.nn.sigmoid(params["alpha_param"])
    betas = jax.nn.softmax(jnp.stack([params["beta_1_param"],
                                      params["beta_2_param"],
                                      params["beta_3_param"]]))
    scal = jnp.concatenate([alpha[None], (1.0 - alpha)[None], betas]).astype(f32)

    def pad_cols(w, to):
        return jnp.pad(w, ((0, 0), (0, to - w.shape[1])))

    # Algebraic fusion (exact identity up to fp rounding) of classifier -> first
    # expand Linear, merged with the padded classifier so each branch is ONE MXU pass.
    w1f = params["wc1"] @ params["wi1a"]                            # (H, H//2) f32
    b1f = params["bc1"] @ params["wi1a"] + params["bi1a"]           # (1, H//2) f32
    wm1 = jnp.concatenate([w1f, pad_cols(params["wc1"], np1)], axis=1).astype(bf16)
    bm1 = jnp.concatenate([b1f, pad_cols(params["bc1"], np1)], axis=1).astype(f32)
    w2f = params["wc2"] @ params["wi2a"]
    b2f = params["bc2"] @ params["wi2a"] + params["bi2a"]
    wm2 = jnp.concatenate([w2f, pad_cols(params["wc2"], np2)], axis=1).astype(bf16)
    bm2 = jnp.concatenate([b2f, pad_cols(params["bc2"], np2)], axis=1).astype(f32)

    wh = params["wh"].astype(bf16)
    bh = params["bh"].astype(f32)
    wi1b = params["wi1b"].astype(bf16)
    bi1b = params["bi1b"].astype(f32)
    wi2b = params["wi2b"].astype(bf16)
    bi2b = params["bi2b"].astype(f32)
    wc3 = pad_cols(params["wc3"], np3).astype(bf16)
    bc3 = pad_cols(params["bc3"], np3).astype(f32)

    resident_ops = (wh, bh, wm1, bm1, wi1b, bi1b, wm2, bm2, wi2b, bi2b, wc3, bc3)
    operands = (scal, x) + resident_ops

    def resident(w):
        idx = lambda i, _nd=w.ndim: (0,) * _nd
        if single_buffer_weights:
            try:  # constant index_map -> never re-fetched; halves weight VMEM (v7x)
                return pl.BlockSpec(w.shape, idx, pipeline_mode=pl.Buffered(1))
            except Exception:
                pass
        return pl.BlockSpec(w.shape, idx)

    in_specs = [pl.BlockSpec(memory_space=pltpu.MemorySpace.SMEM),   # scalars
                pl.BlockSpec((tm, H), lambda i: (i, 0))]             # x tile (bf16)
    in_specs += [resident(w) for w in resident_ops]                  # resident weights
    out_spec = pl.BlockSpec((tm, n_out), lambda i: (i, 0))

    # VMEM budget computed from the actual footprint (2x margin, clamp [16,64] MiB).
    n_buf = 1 if single_buffer_weights else 2
    weight_bytes = sum(int(w.size) * w.dtype.itemsize for w in resident_ops)
    stream_bytes = 2 * (tm * H * 2 + tm * n_out * 4)          # double-buffered x / out
    interm_bytes = 8 * tm * H * 4                              # f32 intermediates
    vmem_limit = int(min(max(2 * (n_buf * weight_bytes + stream_bytes + interm_bytes),
                             16 << 20), 64 << 20))

    # Advisory cost estimate for the XLA scheduler.
    flops = 2 * b_pad * (H * H + H * (Hh + np1) + Hh * H
                         + H * (Hh + np2) + Hh * H + H * np3)
    transcendentals = b_pad * (2 * H + 2 * Hh)                 # four GELU applications
    bytes_accessed = b_pad * H * 2 + weight_bytes + b_pad * n_out * 4

    kernel = functools.partial(_head_kernel, approx_gelu=approx_gelu)

    out = pl.pallas_call(
        kernel,
        grid=(b_pad // tm,),
        in_specs=in_specs,
        out_specs=out_spec,
        out_shape=jax.ShapeDtypeStruct((b_pad, n_out), jnp.float32),
        compiler_params=pltpu.CompilerParams(
            dimension_semantics=("parallel",),          # shard batch across TCs
            vmem_limit_bytes=vmem_limit),
        cost_estimate=pl.CostEstimate(flops=flops,
                                      transcendentals=transcendentals,
                                      bytes_accessed=bytes_accessed),
    )(*operands)

    return {"classifier_level_1": out[:B, 0:n1],
            "classifier_level_2": out[:B, np1:np1 + n2],
            "classifier_level_3": out[:B, np1 + np2:np1 + np2 + n3]}


def _reference(last_hidden_state, params):
    """Pure-JAX f32 reference mirroring the PyTorch forward (eval mode, exact erf GELU)."""
    def gelu(x):
        return 0.5 * x * (1.0 + jax.lax.erf(x * _INV_SQRT_2))

    x = last_hidden_state[:, 0, :]
    h = x @ params["wh"] + params["bh"]
    o1 = h @ params["wc1"] + params["bc1"]
    inc1 = gelu(gelu(o1 @ params["wi1a"] + params["bi1a"]) @ params["wi1b"]
                + params["bi1b"])
    alpha = jax.nn.sigmoid(params["alpha_param"])
    c2 = alpha * inc1 + (1.0 - alpha) * h
    o2 = c2 @ params["wc2"] + params["bc2"]
    inc2 = gelu(gelu(o2 @ params["wi2a"] + params["bi2a"]) @ params["wi2b"]
                + params["bi2b"])
    b1, b2, b3 = jax.nn.softmax(jnp.stack([params["beta_1_param"],
                                           params["beta_2_param"],
                                           params["beta_3_param"]]))
    c3 = b1 * inc1 + b2 * inc2 + b3 * h
    o3 = c3 @ params["wc3"] + params["bc3"]
    return {"classifier_level_1": o1, "classifier_level_2": o2,
            "classifier_level_3": o3}


def _init_params(key, H, n1, n2, n3):
    ks = jax.random.split(key, 16)
    s = 0.05

    def w(k, shape):
        return (s * jax.random.normal(k, shape)).astype(jnp.float32)

    return {
        "wh":   w(ks[0], (H, H)),        "bh":   w(ks[1], (1, H)),
        "wc1":  w(ks[2], (H, n1)),       "bc1":  w(ks[3], (1, n1)),
        "wi1a": w(ks[4], (n1, H // 2)),  "bi1a": w(ks[5], (1, H // 2)),
        "wi1b": w(ks[6], (H // 2, H)),   "bi1b": w(ks[7], (1, H)),
        "wc2":  w(ks[8], (H, n2)),       "bc2":  w(ks[9], (1, n2)),
        "wi2a": w(ks[10], (n2, H // 2)), "bi2a": w(ks[11], (1, H // 2)),
        "wi2b": w(ks[12], (H // 2, H)),  "bi2b": w(ks[13], (1, H)),
        "wc3":  w(ks[14], (H, n3)),      "bc3":  w(ks[15], (1, n3)),
        "alpha_param":  jnp.float32(0.5),
        "beta_1_param": jnp.float32(0.25),
        "beta_2_param": jnp.float32(0.25),
        "beta_3_param": jnp.float32(0.5),
    }


if __name__ == "__main__":
    B, S, H = 2, 8, 32          # batch, seq, d_model
    n1, n2, n3 = 4, 8, 16       # number_of_senses level_1 / level_2 / level_3

    key = jax.random.PRNGKey(0)
    k_x, k_p = jax.random.split(key)
    last_hidden_state = jax.random.normal(k_x, (B, S, H), dtype=jnp.float32)
    params = _init_params(k_p, H, n1, n2, n3)

    logits = jax.jit(multi_iddr_head)(last_hidden_state, params)
    jax.block_until_ready(logits)

    ref = _reference(last_hidden_state, params)
    # Tolerances relaxed vs. the pure-f32 exact-erf reference: the kernel uses bf16
    # MXU operands, the algebraically-fused/merged classifier->expand weights and
    # (by default) the tanh-approximate GELU.
    for name in ("classifier_level_1", "classifier_level_2", "classifier_level_3"):
        assert logits[name].shape == ref[name].shape, name
        assert jnp.allclose(logits[name], ref[name], atol=5e-3, rtol=5e-2), name

    print("KERNEL_OK")
</pallas_src>

<mosaic_0001>
module attributes {stable_mosaic.version = 11 : i64} {
  func.func @_head_kernel(%arg0: i32, %arg1: memref<5xf32, #tpu.memory_space<smem>>, %arg2: memref<16x32xbf16, #tpu.memory_space<vmem>>, %arg3: memref<32x32xbf16, #tpu.memory_space<vmem>>, %arg4: memref<1x32xf32, #tpu.memory_space<vmem>>, %arg5: memref<32x144xbf16, #tpu.memory_space<vmem>>, %arg6: memref<1x144xf32, #tpu.memory_space<vmem>>, %arg7: memref<16x32xbf16, #tpu.memory_space<vmem>>, %arg8: memref<1x32xf32, #tpu.memory_space<vmem>>, %arg9: memref<32x144xbf16, #tpu.memory_space<vmem>>, %arg10: memref<1x144xf32, #tpu.memory_space<vmem>>, %arg11: memref<16x32xbf16, #tpu.memory_space<vmem>>, %arg12: memref<1x32xf32, #tpu.memory_space<vmem>>, %arg13: memref<32x128xbf16, #tpu.memory_space<vmem>>, %arg14: memref<1x128xf32, #tpu.memory_space<vmem>>, %arg15: memref<16x384xf32, #tpu.memory_space<vmem>>) attributes {dimension_semantics = [#tpu.dimension_semantics<parallel>], iteration_bounds = array<i64: 1>, scalar_prefetch = 0 : i64, scratch_operands = 0 : i64, tpu.core_type = #tpu.core_type<tc>, window_params = [{transform_indices = @transform_0, window_bounds = array<i64: 5>}, {transform_indices = @transform_1, window_bounds = array<i64: 16, 32>}, {pipeline_mode = #tpu.pipeline_mode<synchronous>, transform_indices = @transform_2, window_bounds = array<i64: 32, 32>}, {pipeline_mode = #tpu.pipeline_mode<synchronous>, transform_indices = @transform_3, window_bounds = array<i64: 1, 32>}, {pipeline_mode = #tpu.pipeline_mode<synchronous>, transform_indices = @transform_4, window_bounds = array<i64: 32, 144>}, {pipeline_mode = #tpu.pipeline_mode<synchronous>, transform_indices = @transform_5, window_bounds = array<i64: 1, 144>}, {pipeline_mode = #tpu.pipeline_mode<synchronous>, transform_indices = @transform_6, window_bounds = array<i64: 16, 32>}, {pipeline_mode = #tpu.pipeline_mode<synchronous>, transform_indices = @transform_7, window_bounds = array<i64: 1, 32>}, {pipeline_mode = #tpu.pipeline_mode<synchronous>, transform_indices = @transform_8, window_bounds = array<i64: 32, 144>}, {pipeline_mode = #tpu.pipeline_mode<synchronous>, transform_indices = @transform_9, window_bounds = array<i64: 1, 144>}, {pipeline_mode = #tpu.pipeline_mode<synchronous>, transform_indices = @transform_10, window_bounds = array<i64: 16, 32>}, {pipeline_mode = #tpu.pipeline_mode<synchronous>, transform_indices = @transform_11, window_bounds = array<i64: 1, 32>}, {pipeline_mode = #tpu.pipeline_mode<synchronous>, transform_indices = @transform_12, window_bounds = array<i64: 32, 128>}, {pipeline_mode = #tpu.pipeline_mode<synchronous>, transform_indices = @transform_13, window_bounds = array<i64: 1, 128>}, {transform_indices = @transform_14, window_bounds = array<i64: 16, 384>}]} {
    %c0 = arith.constant 0 : index
    %0 = memref.load %arg1[%c0] : memref<5xf32, #tpu.memory_space<smem>>
    %c1 = arith.constant 1 : index
    %1 = memref.load %arg1[%c1] : memref<5xf32, #tpu.memory_space<smem>>
    %c2 = arith.constant 2 : index
    %2 = memref.load %arg1[%c2] : memref<5xf32, #tpu.memory_space<smem>>
    %c3 = arith.constant 3 : index
    %3 = memref.load %arg1[%c3] : memref<5xf32, #tpu.memory_space<smem>>
    %c4 = arith.constant 4 : index
    %4 = memref.load %arg1[%c4] : memref<5xf32, #tpu.memory_space<smem>>
    %c0_0 = arith.constant 0 : index
    %c0_1 = arith.constant 0 : index
    %5 = vector.load %arg2[%c0_0, %c0_1] : memref<16x32xbf16, #tpu.memory_space<vmem>>, vector<16x32xbf16>
    %c0_2 = arith.constant 0 : index
    %c0_3 = arith.constant 0 : index
    %6 = vector.load %arg3[%c0_2, %c0_3] : memref<32x32xbf16, #tpu.memory_space<vmem>>, vector<32x32xbf16>
    %cst = arith.constant dense<0.000000e+00> : vector<16x32xf32>
    %7 = tpu.matmul %5, %6, %cst {dimension_numbers = #tpu.dot_dimension_numbers<[1], [0], [0], [1], [0, 0, 1, 1], [], []>} : vector<16x32xbf16>, vector<32x32xbf16>, vector<16x32xf32> -> vector<16x32xf32>
    %c0_4 = arith.constant 0 : index
    %c0_5 = arith.constant 0 : index
    %8 = vector.load %arg4[%c0_4, %c0_5] : memref<1x32xf32, #tpu.memory_space<vmem>>, vector<1x32xf32>
    %9 = vector.broadcast %8 : vector<1x32xf32> to vector<16x32xf32>
    %10 = arith.addf %7, %9 : vector<16x32xf32>
    %11 = arith.truncf %10 : vector<16x32xf32> to vector<16x32xbf16>
    %c0_6 = arith.constant 0 : index
    %c0_7 = arith.constant 0 : index
    %12 = vector.load %arg5[%c0_6, %c0_7] : memref<32x144xbf16, #tpu.memory_space<vmem>>, vector<32x144xbf16>
    %cst_8 = arith.constant dense<0.000000e+00> : vector<16x144xf32>
    %13 = tpu.matmul %11, %12, %cst_8 {dimension_numbers = #tpu.dot_dimension_numbers<[1], [0], [0], [1], [0, 0, 1, 1], [], []>} : vector<16x32xbf16>, vector<32x144xbf16>, vector<16x144xf32> -> vector<16x144xf32>
    %c0_9 = arith.constant 0 : index
    %c0_10 = arith.constant 0 : index
    %14 = vector.load %arg6[%c0_9, %c0_10] : memref<1x144xf32, #tpu.memory_space<vmem>>, vector<1x144xf32>
    %15 = vector.broadcast %14 : vector<1x144xf32> to vector<16x144xf32>
    %16 = arith.addf %13, %15 : vector<16x144xf32>
    %17 = vector.extract_strided_slice %16 {offsets = [0, 0], sizes = [16, 16], strides = [1, 1]} : vector<16x144xf32> to vector<16x16xf32>
    %cst_11 = arith.constant 5.000000e-01 : f32
    %18 = vector.broadcast %cst_11 : f32 to vector<16x16xf32>
    %19 = arith.mulf %18, %17 : vector<16x16xf32>
    %20 = arith.mulf %17, %17 : vector<16x16xf32>
    %21 = arith.mulf %20, %17 : vector<16x16xf32>
    %cst_12 = arith.constant 4.471500e-02 : f32
    %22 = vector.broadcast %cst_12 : f32 to vector<16x16xf32>
    %23 = arith.mulf %22, %21 : vector<16x16xf32>
    %24 = arith.addf %17, %23 : vector<16x16xf32>
    %cst_13 = arith.constant 0.797884583 : f32
    %25 = vector.broadcast %cst_13 : f32 to vector<16x16xf32>
    %26 = arith.mulf %25, %24 : vector<16x16xf32>
    %27 = math.tanh %26 : vector<16x16xf32>
    %cst_14 = arith.constant 1.000000e+00 : f32
    %28 = vector.broadcast %cst_14 : f32 to vector<16x16xf32>
    %29 = arith.addf %28, %27 : vector<16x16xf32>
    %30 = arith.mulf %19, %29 : vector<16x16xf32>
    %31 = vector.extract_strided_slice %16 {offsets = [0, 16], sizes = [16, 128], strides = [1, 1]} : vector<16x144xf32> to vector<16x128xf32>
    %32 = arith.truncf %30 : vector<16x16xf32> to vector<16x16xbf16>
    %c0_15 = arith.constant 0 : index
    %c0_16 = arith.constant 0 : index
    %33 = vector.load %arg7[%c0_15, %c0_16] : memref<16x32xbf16, #tpu.memory_space<vmem>>, vector<16x32xbf16>
    %cst_17 = arith.constant dense<0.000000e+00> : vector<16x32xf32>
    %34 = tpu.matmul %32, %33, %cst_17 {dimension_numbers = #tpu.dot_dimension_numbers<[1], [0], [0], [1], [0, 0, 1, 1], [], []>} : vector<16x16xbf16>, vector<16x32xbf16>, vector<16x32xf32> -> vector<16x32xf32>
    %c0_18 = arith.constant 0 : index
    %c0_19 = arith.constant 0 : index
    %35 = vector.load %arg8[%c0_18, %c0_19] : memref<1x32xf32, #tpu.memory_space<vmem>>, vector<1x32xf32>
    %36 = vector.broadcast %35 : vector<1x32xf32> to vector<16x32xf32>
    %37 = arith.addf %34, %36 : vector<16x32xf32>
    %cst_20 = arith.constant 5.000000e-01 : f32
    %38 = vector.broadcast %cst_20 : f32 to vector<16x32xf32>
    %39 = arith.mulf %38, %37 : vector<16x32xf32>
    %40 = arith.mulf %37, %37 : vector<16x32xf32>
    %41 = arith.mulf %40, %37 : vector<16x32xf32>
    %cst_21 = arith.constant 4.471500e-02 : f32
    %42 = vector.broadcast %cst_21 : f32 to vector<16x32xf32>
    %43 = arith.mulf %42, %41 : vector<16x32xf32>
    %44 = arith.addf %37, %43 : vector<16x32xf32>
    %cst_22 = arith.constant 0.797884583 : f32
    %45 = vector.broadcast %cst_22 : f32 to vector<16x32xf32>
    %46 = arith.mulf %45, %44 : vector<16x32xf32>
    %47 = math.tanh %46 : vector<16x32xf32>
    %cst_23 = arith.constant 1.000000e+00 : f32
    %48 = vector.broadcast %cst_23 : f32 to vector<16x32xf32>
    %49 = arith.addf %48, %47 : vector<16x32xf32>
    %50 = arith.mulf %39, %49 : vector<16x32xf32>
    %51 = vector.broadcast %0 : f32 to vector<16x32xf32>
    %52 = arith.mulf %51, %50 : vector<16x32xf32>
    %53 = vector.broadcast %1 : f32 to vector<16x32xf32>
    %54 = arith.mulf %53, %10 : vector<16x32xf32>
    %55 = arith.addf %52, %54 : vector<16x32xf32>
    %56 = arith.truncf %55 : vector<16x32xf32> to vector<16x32xbf16>
    %c0_24 = arith.constant 0 : index
    %c0_25 = arith.constant 0 : index
    %57 = vector.load %arg9[%c0_24, %c0_25] : memref<32x144xbf16, #tpu.memory_space<vmem>>, vector<32x144xbf16>
    %cst_26 = arith.constant dense<0.000000e+00> : vector<16x144xf32>
    %58 = tpu.matmul %56, %57, %cst_26 {dimension_numbers = #tpu.dot_dimension_numbers<[1], [0], [0], [1], [0, 0, 1, 1], [], []>} : vector<16x32xbf16>, vector<32x144xbf16>, vector<16x144xf32> -> vector<16x144xf32>
    %c0_27 = arith.constant 0 : index
    %c0_28 = arith.constant 0 : index
    %59 = vector.load %arg10[%c0_27, %c0_28] : memref<1x144xf32, #tpu.memory_space<vmem>>, vector<1x144xf32>
    %60 = vector.broadcast %59 : vector<1x144xf32> to vector<16x144xf32>
    %61 = arith.addf %58, %60 : vector<16x144xf32>
    %62 = vector.extract_strided_slice %61 {offsets = [0, 0], sizes = [16, 16], strides = [1, 1]} : vector<16x144xf32> to vector<16x16xf32>
    %cst_29 = arith.constant 5.000000e-01 : f32
    %63 = vector.broadcast %cst_29 : f32 to vector<16x16xf32>
    %64 = arith.mulf %63, %62 : vector<16x16xf32>
    %65 = arith.mulf %62, %62 : vector<16x16xf32>
    %66 = arith.mulf %65, %62 : vector<16x16xf32>
    %cst_30 = arith.constant 4.471500e-02 : f32
    %67 = vector.broadcast %cst_30 : f32 to vector<16x16xf32>
    %68 = arith.mulf %67, %66 : vector<16x16xf32>
    %69 = arith.addf %62, %68 : vector<16x16xf32>
    %cst_31 = arith.constant 0.797884583 : f32
    %70 = vector.broadcast %cst_31 : f32 to vector<16x16xf32>
    %71 = arith.mulf %70, %69 : vector<16x16xf32>
    %72 = math.tanh %71 : vector<16x16xf32>
    %cst_32 = arith.constant 1.000000e+00 : f32
    %73 = vector.broadcast %cst_32 : f32 to vector<16x16xf32>
    %74 = arith.addf %73, %72 : vector<16x16xf32>
    %75 = arith.mulf %64, %74 : vector<16x16xf32>
    %76 = vector.extract_strided_slice %61 {offsets = [0, 16], sizes = [16, 128], strides = [1, 1]} : vector<16x144xf32> to vector<16x128xf32>
    %77 = arith.truncf %75 : vector<16x16xf32> to vector<16x16xbf16>
    %c0_33 = arith.constant 0 : index
    %c0_34 = arith.constant 0 : index
    %78 = vector.load %arg11[%c0_33, %c0_34] : memref<16x32xbf16, #tpu.memory_space<vmem>>, vector<16x32xbf16>
    %cst_35 = arith.constant dense<0.000000e+00> : vector<16x32xf32>
    %79 = tpu.matmul %77, %78, %cst_35 {dimension_numbers = #tpu.dot_dimension_numbers<[1], [0], [0], [1], [0, 0, 1, 1], [], []>} : vector<16x16xbf16>, vector<16x32xbf16>, vector<16x32xf32> -> vector<16x32xf32>
    %c0_36 = arith.constant 0 : index
    %c0_37 = arith.constant 0 : index
    %80 = vector.load %arg12[%c0_36, %c0_37] : memref<1x32xf32, #tpu.memory_space<vmem>>, vector<1x32xf32>
    %81 = vector.broadcast %80 : vector<1x32xf32> to vector<16x32xf32>
    %82 = arith.addf %79, %81 : vector<16x32xf32>
    %cst_38 = arith.constant 5.000000e-01 : f32
    %83 = vector.broadcast %cst_38 : f32 to vector<16x32xf32>
    %84 = arith.mulf %83, %82 : vector<16x32xf32>
    %85 = arith.mulf %82, %82 : vector<16x32xf32>
    %86 = arith.mulf %85, %82 : vector<16x32xf32>
    %cst_39 = arith.constant 4.471500e-02 : f32
    %87 = vector.broadcast %cst_39 : f32 to vector<16x32xf32>
    %88 = arith.mulf %87, %86 : vector<16x32xf32>
    %89 = arith.addf %82, %88 : vector<16x32xf32>
    %cst_40 = arith.constant 0.797884583 : f32
    %90 = vector.broadcast %cst_40 : f32 to vector<16x32xf32>
    %91 = arith.mulf %90, %89 : vector<16x32xf32>
    %92 = math.tanh %91 : vector<16x32xf32>
    %cst_41 = arith.constant 1.000000e+00 : f32
    %93 = vector.broadcast %cst_41 : f32 to vector<16x32xf32>
    %94 = arith.addf %93, %92 : vector<16x32xf32>
    %95 = arith.mulf %84, %94 : vector<16x32xf32>
    %96 = vector.broadcast %2 : f32 to vector<16x32xf32>
    %97 = arith.mulf %96, %50 : vector<16x32xf32>
    %98 = vector.broadcast %3 : f32 to vector<16x32xf32>
    %99 = arith.mulf %98, %95 : vector<16x32xf32>
    %100 = arith.addf %97, %99 : vector<16x32xf32>
    %101 = vector.broadcast %4 : f32 to vector<16x32xf32>
    %102 = arith.mulf %101, %10 : vector<16x32xf32>
    %103 = arith.addf %100, %102 : vector<16x32xf32>
    %104 = arith.truncf %103 : vector<16x32xf32> to vector<16x32xbf16>
    %c0_42 = arith.constant 0 : index
    %c0_43 = arith.constant 0 : index
    %105 = vector.load %arg13[%c0_42, %c0_43] : memref<32x128xbf16, #tpu.memory_space<vmem>>, vector<32x128xbf16>
    %cst_44 = arith.constant dense<0.000000e+00> : vector<16x128xf32>
    %106 = tpu.matmul %104, %105, %cst_44 {dimension_numbers = #tpu.dot_dimension_numbers<[1], [0], [0], [1], [0, 0, 1, 1], [], []>} : vector<16x32xbf16>, vector<32x128xbf16>, vector<16x128xf32> -> vector<16x128xf32>
    %c0_45 = arith.constant 0 : index
    %c0_46 = arith.constant 0 : index
    %107 = vector.load %arg14[%c0_45, %c0_46] : memref<1x128xf32, #tpu.memory_space<vmem>>, vector<1x128xf32>
    %108 = vector.broadcast %107 : vector<1x128xf32> to vector<16x128xf32>
    %109 = arith.addf %106, %108 : vector<16x128xf32>
    %c0_47 = arith.constant 0 : index
    %c0_48 = arith.constant 0 : index
    %110 = vector.load %arg15[%c0_47, %c0_48] : memref<16x384xf32, #tpu.memory_space<vmem>>, vector<16x128xf32>
    tpu.vector_store %arg15[%c0_47, %c0_48], %31 {strides = array<i32>} : memref<16x384xf32, #tpu.memory_space<vmem>>, vector<16x128xf32>,
    %c0_49 = arith.constant 0 : index
    %c128 = arith.constant 128 : index
    %111 = vector.load %arg15[%c0_49, %c128] : memref<16x384xf32, #tpu.memory_space<vmem>>, vector<16x128xf32>
    tpu.vector_store %arg15[%c0_49, %c128], %76 {strides = array<i32>} : memref<16x384xf32, #tpu.memory_space<vmem>>, vector<16x128xf32>,
    %c0_50 = arith.constant 0 : index
    %c256 = arith.constant 256 : index
    %112 = vector.load %arg15[%c0_50, %c256] : memref<16x384xf32, #tpu.memory_space<vmem>>, vector<16x128xf32>
    tpu.vector_store %arg15[%c0_50, %c256], %109 {strides = array<i32>} : memref<16x384xf32, #tpu.memory_space<vmem>>, vector<16x128xf32>,
    return
  }
  func.func @transform_0(%arg0: i32) -> i32 {
    %c0_i32 = arith.constant 0 : i32
    %c0_i32_0 = arith.constant 0 : i32
    return %c0_i32 : i32
  }
  func.func @transform_1(%arg0: i32) -> (i32, i32) {
    %c0_i32 = arith.constant 0 : i32
    %c0_i32_0 = arith.constant 0 : i32
    return %arg0, %c0_i32 : i32, i32
  }
  func.func @transform_2(%arg0: i32) -> (i32, i32) {
    %c0_i32 = arith.constant 0 : i32
    %c0_i32_0 = arith.constant 0 : i32
    %c0_i32_1 = arith.constant 0 : i32
    return %c0_i32, %c0_i32_0 : i32, i32
  }
  func.func @transform_3(%arg0: i32) -> (i32, i32) {
    %c0_i32 = arith.constant 0 : i32
    %c0_i32_0 = arith.constant 0 : i32
    %c0_i32_1 = arith.constant 0 : i32
    return %c0_i32, %c0_i32_0 : i32, i32
  }
  func.func @transform_4(%arg0: i32) -> (i32, i32) {
    %c0_i32 = arith.constant 0 : i32
    %c0_i32_0 = arith.constant 0 : i32
    %c0_i32_1 = arith.constant 0 : i32
    return %c0_i32, %c0_i32_0 : i32, i32
  }
  func.func @transform_5(%arg0: i32) -> (i32, i32) {
    %c0_i32 = arith.constant 0 : i32
    %c0_i32_0 = arith.constant 0 : i32
    %c0_i32_1 = arith.constant 0 : i32
    return %c0_i32, %c0_i32_0 : i32, i32
  }
  func.func @transform_6(%arg0: i32) -> (i32, i32) {
    %c0_i32 = arith.constant 0 : i32
    %c0_i32_0 = arith.constant 0 : i32
    %c0_i32_1 = arith.constant 0 : i32
    return %c0_i32, %c0_i32_0 : i32, i32
  }
  func.func @transform_7(%arg0: i32) -> (i32, i32) {
    %c0_i32 = arith.constant 0 : i32
    %c0_i32_0 = arith.constant 0 : i32
    %c0_i32_1 = arith.constant 0 : i32
    return %c0_i32, %c0_i32_0 : i32, i32
  }
  func.func @transform_8(%arg0: i32) -> (i32, i32) {
    %c0_i32 = arith.constant 0 : i32
    %c0_i32_0 = arith.constant 0 : i32
    %c0_i32_1 = arith.constant 0 : i32
    return %c0_i32, %c0_i32_0 : i32, i32
  }
  func.func @transform_9(%arg0: i32) -> (i32, i32) {
    %c0_i32 = arith.constant 0 : i32
    %c0_i32_0 = arith.constant 0 : i32
    %c0_i32_1 = arith.constant 0 : i32
    return %c0_i32, %c0_i32_0 : i32, i32
  }
  func.func @transform_10(%arg0: i32) -> (i32, i32) {
    %c0_i32 = arith.constant 0 : i32
    %c0_i32_0 = arith.constant 0 : i32
    %c0_i32_1 = arith.constant 0 : i32
    return %c0_i32, %c0_i32_0 : i32, i32
  }
  func.func @transform_11(%arg0: i32) -> (i32, i32) {
    %c0_i32 = arith.constant 0 : i32
    %c0_i32_0 = arith.constant 0 : i32
    %c0_i32_1 = arith.constant 0 : i32
    return %c0_i32, %c0_i32_0 : i32, i32
  }
  func.func @transform_12(%arg0: i32) -> (i32, i32) {
    %c0_i32 = arith.constant 0 : i32
    %c0_i32_0 = arith.constant 0 : i32
    %c0_i32_1 = arith.constant 0 : i32
    return %c0_i32, %c0_i32_0 : i32, i32
  }
  func.func @transform_13(%arg0: i32) -> (i32, i32) {
    %c0_i32 = arith.constant 0 : i32
    %c0_i32_0 = arith.constant 0 : i32
    %c0_i32_1 = arith.constant 0 : i32
    return %c0_i32, %c0_i32_0 : i32, i32
  }
  func.func @transform_14(%arg0: i32) -> (i32, i32) {
    %c0_i32 = arith.constant 0 : i32
    %c0_i32_0 = arith.constant 0 : i32
    return %arg0, %c0_i32 : i32, i32
  }
}

</mosaic_0001>

<bundles_post_ra>
// kernel: multi_iddr_head.1
= control target key start
LH: loop header
LB: loop body
LE: loop exit
PB: predicated region body
PF: predicated region fallthrough
CT: control target
= control target key end

     0   :  { %19 = vsyncpa [#allocation3], 0  ;;  %s594_s16 = smov [#allocation2]   ;;  %s817_s0 = inlined_call_operand.vmem [shape: f32[5], index: 0, kind: input, shape index: {}]   ;;  %s818_s1 = inlined_call_operand.vmem [shape: bf16[16,32], index: 1, kind: input, shape index: {}]   ;;  %s819_s2 = inlined_call_operand.vmem [shape: bf16[32,32], index: 2, kind: input, shape index: {}]   ;;  %s820_s3 = inlined_call_operand.vmem [shape: f32[1,32], index: 3, kind: input, shape index: {}]   ;;  %s821_s4 = inlined_call_operand.vmem [shape: bf16[32,144], index: 4, kind: input, shape index: {}]   ;;  %s822_s5 = inlined_call_operand.vmem [shape: f32[1,144], index: 5, kind: input, shape index: {}]   ;;  %s823_s6 = inlined_call_operand.vmem [shape: bf16[16,32], index: 6, kind: input, shape index: {}]   ;;  %s824_s7 = inlined_call_operand.vmem [shape: f32[1,32], index: 7, kind: input, shape index: {}]   ;;  %s825_s8 = inlined_call_operand.vmem [shape: bf16[32,144], index: 8, kind: input, shape index: {}]   ;;  %s826_s9 = inlined_call_operand.vmem [shape: f32[1,144], index: 9, kind: input, shape index: {}]   ;;  %s827_s10 = inlined_call_operand.vmem [shape: bf16[16,32], index: 10, kind: input, shape index: {}]   ;;  %s828_s11 = inlined_call_operand.vmem [shape: f32[1,32], index: 11, kind: input, shape index: {}]   ;;  %s829_s12 = inlined_call_operand.vmem [shape: bf16[32,128], index: 12, kind: input, shape index: {}]   ;;  %s830_s13 = inlined_call_operand.vmem [shape: f32[1,128], index: 13, kind: input, shape index: {}]   ;;  %s831_s14 = inlined_call_operand.vmem [shape: f32[16,384], index: 14, kind: output, shape index: {}]  }
   0x1   :  { %s25_s15 = sshll.u32 %s817_s0, 4  ;;  %s26_s15 = int_to_ptr.vmem [resolvable:$true] %s25_s15 }
   0x2   :  { %28 = dma.vmem_to_smem %s26_s15, 16, %s594_s16, [#allocation3]  }
   0x3   :  { %592 = dma.done.wait [#allocation3], 16  }
   0x4   :  { %593 = vsyncadd [#allocation3], 4294967280 }
   0x5   :  { %59 = sfence }
   0x6   :  { %v545_v0 = vld [vmem:[%s819_s2 + $0x8] sm:$0xff]  ;;  %v544_v1 = vld [vmem:[%s819_s2] sm:$0xff]  ;;  %vm93_vm0 = vcmask 261120   ;;  %v498_v3 = vld [vmem:[%s821_s4 + $0x10] sm:$0xf]  ;;  %vm204_vm1 = vcmask 130048  }
   0x7   :  { %103 = vmatpush.bf16.msra.mxu0 %v545_v0  ;;  %v543_v2 = vld [vmem:[%s818_s1] sm:$0xff]  ;;  %v549_v4 = vld [vmem:[%s821_s4 + $0x14] sm:$0xf0]  ;;  %v548_v5 = vld [vmem:[%s821_s4 + $0x14] sm:$0xf]  ;;  %vm439_vm2 = vcmask 916480  }
   0x8   :  { %v499_v6 = vor.u32 %v549_v4, %v498_v3  ;;  %v500_v7 = vld [vmem:[%s821_s4 + $0x18] sm:$0xf0]  ;;  %v490_v9 = vld [vmem:[%s821_s4] sm:$0xf]  ;;  %v547_v10 = vld [vmem:[%s821_s4 + $0x4] sm:$0xf0] }
   0x9   :  { %v503_v8 = vor.u32 %v548_v5, %v500_v7  ;;  %v546_v11 = vld [vmem:[%s821_s4 + $0x4] sm:$0xf]  ;;  %v491_v12 = vor.u32 %v547_v10, %v490_v9  ;;  %v492_v13 = vld [vmem:[%s821_s4 + $0x8] sm:$0xf0]  ;;  %v560_v16 = vld [vmem:[%s820_s3] ss:$0 sm:$0xff] }
   0xa   :  { %151 = vmatpush.bf16.msra.mxu1 %v499_v6  ;;  %v495_v14 = vor.u32 %v546_v11, %v492_v13  ;;  %v550_v21 = vld [vmem:[%s823_s6] sm:$0xff]  ;;  %s595_s3 = smov 112   ;;  %v521_v58 = vld [vmem:[%s825_s8 + $0x10] sm:$0xf]  ;;  %v554_v59 = vld [vmem:[%s825_s8 + $0x14] sm:$0xf0] }
   0xb   :  { %104 = vmatpush.bf16.msra.mxu0 %v544_v1  ;;  %165 = vmatpush.bf16.msra.mxu2 %v503_v8  ;;  %v116_v22 = vld [vmem:[%s822_s5] sm:$0x3]  ;;  %v553_v60 = vld [vmem:[%s825_s8 + $0x14] sm:$0xf]  ;;  %v522_v62 = vor.u32 %v554_v59, %v521_v58  ;;  %v523_v63 = vld [vmem:[%s825_s8 + $0x18] sm:$0xf0] }
   0xc   :  { %215 = vmatpush.bf16.msra.mxu3 %v550_v21  ;;  %v118_v23 = vperm.slane %v116_v22, 0  ;;  %v119_v28 = vperm.slane %v116_v22, 1  ;;  %v561_v61 = vld [vmem:[%s824_s7] ss:$0 sm:$0xff]  ;;  %v526_v0 = vor.u32 %v553_v60, %v523_v63  ;;  %v552_v3 = vld [vmem:[%s825_s8 + $0x4] sm:$0xf0] }
   0xd   :  { %v551_v4 = vld [vmem:[%s825_s8 + $0x4] sm:$0xf]  ;;  %v515_v7 = vld [vmem:[%s825_s8 + $0x8] sm:$0xf0]  ;;  %s61_s23 = sld [smem:[#allocation2]] }
   0xe   :  { %487 = vmatmul.msk.bf16.vlgmr.msra.gmra.mxu0 %vm93_vm0, %v543_v2  ;;  %152 = vmatpush.bf16.msra.mxu1 %v491_v12  ;;  %v513_v2 = vld [vmem:[%s825_s8] sm:$0xf]  ;;  %v518_v8 = vor.u32 %v551_v4, %v515_v7  ;;  %s471_s5 = sld [smem:[#allocation2 + $0x1]] }
   0xf   :  { %166 = vmatpush.bf16.msra.mxu2 %v495_v14  ;;  %302 = vmatpush.bf16.msrb.mxu0 %v526_v0  ;;  %v514_v6 = vor.u32 %v552_v3, %v513_v2  ;;  %s473_s15 = sld [smem:[#allocation2 + $0x3]] }
  0x10   :  { %288 = vmatpush.bf16.msrb.mxu3 %v522_v62  ;;  %s474_s16 = sld [smem:[#allocation2 + $0x4]] }
  0x13   :  { %303 = vmatpush.bf16.msrb.mxu0 %v518_v8 }
  0x14   :  { %289 = vmatpush.bf16.msrb.mxu3 %v514_v6 }
  0x8b   :  { %v106_v15 = vpop.f32.mrf.mxu0 }
  0x8c   :  { %v711_v18 = vadd.f32 %v560_v16, %v106_v15 }
  0x93   :  { %v108_v17 = vpop.f32.mrf.mxu0 }
  0x94   :  { %v713_v19 = vadd.f32 %v560_v16, %v108_v17 }
  0x96   :  { %v111_v20 = vpack.c.bf16 %v713_v19, %v711_v18 }
  0x98   :  { %504 = vmatmul.msk.bf16.vlgmr.msra.gmra.mxu1 %vm93_vm0, %v111_v20  ;;  %505 = vmatmul.msk.bf16.vlgmr.msra.gmra.mxu2 %vm93_vm0, %v111_v20 }
 0x115   :  { %v154_v24 = vpop.f32.mrf.mxu1 }
 0x116   :  { %v155_v25 = vadd.f32 %v154_v24, %v118_v23 }
 0x118   :  { %v175_v26 = vmul.f32 %v155_v25, %v155_v25  ;;  %431 = vrot.lane.b32.xlu0 %v155_v25, %s595_s3  ;;  %v173_v46 = vmul.f32 0.5, %v155_v25 }
 0x11a   :  { %v177_v27 = vmul.f32 %v175_v26, %v155_v25 }
 0x11b   :  { %v168_v29 = vpop.f32.mrf.mxu2 }
 0x11c   :  { %v179_v30 = vmul.f32 0.044715, %v177_v27  ;;  %v169_v32 = vadd.f32 %v168_v29, %v119_v28 }
 0x11d   :  { %v156_v31 = vpop.f32.mrf.mxu1 }
 0x11e   :  { %v157_v33 = vadd.f32 %v156_v31, %v118_v23  ;;  %v181_v34 = vadd.f32 %v179_v30, %v155_v25  ;;  %v243_v31 = vstv %s471_s5 }
 0x120   :  { %v176_v35 = vmul.f32 %v157_v33, %v157_v33  ;;  %435 = vrot.lane.b32.xlu1 %v157_v33, %s595_s3  ;;  %433 = vrot.lane.b32.xlu0 %v169_v32, %s595_s3  ;;  %v183_v37 = vmul.f32 0.7978846, %v181_v34  ;;  %v174_v47 = vmul.f32 0.5, %v157_v33  ;;  %v244_v34 = vmul.f32 %v243_v31, %v711_v18 }
 0x122   :  { %v178_v36 = vmul.f32 %v176_v35, %v157_v33  ;;  %564 = vtanh.f32 %v183_v37  ;;  %v245_v35 = vmul.f32 %v243_v31, %v713_v19 }
 0x123   :  { %v170_v38 = vpop.f32.mrf.mxu2 }
 0x124   :  { %v180_v39 = vmul.f32 0.044715, %v178_v36  ;;  %v171_v40 = vadd.f32 %v170_v38, %v119_v28  ;;  %v240_v28 = vstv %s61_s23 }
 0x126   :  { %v182_v41 = vadd.f32 %v180_v39, %v157_v33 }
 0x128   :  { %437 = vrot.lane.b32.xlu1 %v171_v40, %s595_s3  ;;  %v184_v42 = vmul.f32 0.7978846, %v182_v41  ;;  %v565_v43 = vpop.eup %564  ;;  %v555_v40 = vld [vmem:[%s827_s10] sm:$0xff] }
 0x129   :  { %v187_v44 = vadd.f32 1.0, %v565_v43  ;;  %351 = vmatpush.bf16.msrb.mxu1 %v555_v40  ;;  %v384_v40 = vstv %s474_s16 }
 0x12a   :  { %566 = vtanh.f32 %v184_v42  ;;  %v253_v42 = vld [vmem:[%s826_s9] sm:$0x3] }
 0x12b   :  { %v189_v49 = vmul.f32 %v187_v44, %v173_v46  ;;  %v255_v43 = vperm.slane %v253_v42, 0 }
 0x130   :  { %v567_v45 = vpop.eup %566 }
 0x131   :  { %v188_v48 = vadd.f32 1.0, %v567_v45  ;;  %v256_v45 = vperm.slane %v253_v42, 1 }
 0x133   :  { %v190_v50 = vmul.f32 %v188_v48, %v174_v47 }
 0x135   :  { %v191_v51 = vpack.c.bf16 %v190_v50, %v189_v49 }
 0x137   :  { %510 = vmatmul.msk.bf16.vlgmr.msra.gmra.mxu3 %vm204_vm1, %v191_v51 }
 0x18a   :  { %v432_v52 = vpop.permute.xlu0 %431 }
 0x192   :  { %v436_v53 = vpop.permute.xlu1 %435  ;;  %v434_v54 = vpop.permute.xlu0 %433 }
 0x193   :  { %v440_v55 = vsel %vm439_vm2, %v432_v52, %v434_v54 }
 0x194   :  { %444 = vst [vmem:[%s831_s14] sm:$0xff] %v440_v55 }
 0x19a   :  { %v438_v56 = vpop.permute.xlu1 %437 }
 0x19b   :  { %v441_v57 = vsel %vm439_vm2, %v436_v53, %v438_v56 }
 0x19c   :  { %445 = vst [vmem:[%s831_s14 + $0x18] sm:$0xff] %v441_v57 }
 0x1ba   :  { %v217_v1 = vpop.f32.mrf.mxu3 }
 0x1bb   :  { %v218_v5 = vadd.f32 %v561_v61, %v217_v1 }
 0x1bd   :  { %v224_v9 = vmul.f32 %v218_v5, %v218_v5  ;;  %v222_v25 = vmul.f32 0.5, %v218_v5 }
 0x1bf   :  { %v226_v10 = vmul.f32 %v224_v9, %v218_v5 }
 0x1c1   :  { %v228_v11 = vmul.f32 0.044715, %v226_v10 }
 0x1c2   :  { %v219_v12 = vpop.f32.mrf.mxu3 }
 0x1c3   :  { %v230_v13 = vadd.f32 %v228_v11, %v218_v5  ;;  %v220_v14 = vadd.f32 %v561_v61, %v219_v12 }
 0x1c5   :  { %v232_v15 = vmul.f32 0.7978846, %v230_v13  ;;  %v225_v16 = vmul.f32 %v220_v14, %v220_v14  ;;  %v223_v29 = vmul.f32 0.5, %v220_v14  ;;  %v562_v13 = vld [vmem:[%s828_s11] ss:$0 sm:$0xff]  ;;  %s472_s11 = sld [smem:[#allocation2 + $0x2]] }
 0x1c7   :  { %568 = vtanh.f32 %v232_v15  ;;  %v227_v17 = vmul.f32 %v225_v16, %v220_v14 }
 0x1c9   :  { %v229_v20 = vmul.f32 0.044715, %v227_v17  ;;  %v556_v17 = vld [vmem:[%s829_s12] sm:$0xff] }
 0x1cb   :  { %v231_v21 = vadd.f32 %v229_v20, %v220_v14  ;;  %v557_v14 = vld [vmem:[%s829_s12 + $0x8] sm:$0xff] }
 0x1cc   :  { %419 = vmatpush.bf16.msrb.mxu2 %v557_v14 }
 0x1cd   :  { %v569_v22 = vpop.eup %568  ;;  %v233_v23 = vmul.f32 0.7978846, %v231_v21 }
 0x1ce   :  { %v236_v24 = vadd.f32 1.0, %v569_v22 }
 0x1cf   :  { %570 = vtanh.f32 %v233_v23 }
 0x1d0   :  { %v765_v26 = vmul.f32 %v236_v24, %v222_v25  ;;  %420 = vmatpush.bf16.msrb.mxu2 %v556_v17 }
 0x1d2   :  { %v241_v33 = vmul.f32 %v240_v28, %v765_v26 }
 0x1d4   :  { %v246_v37 = vadd.f32 %v244_v34, %v241_v33 }
 0x1d5   :  { %v571_v27 = vpop.eup %570 }
 0x1d6   :  { %v237_v30 = vadd.f32 1.0, %v571_v27 }
 0x1d8   :  { %v767_v32 = vmul.f32 %v237_v30, %v223_v29 }
 0x1da   :  { %v242_v36 = vmul.f32 %v240_v28, %v767_v32 }
 0x1dc   :  { %v247_v38 = vadd.f32 %v245_v35, %v242_v36 }
 0x1de   :  { %v248_v39 = vpack.c.bf16 %v247_v38, %v246_v37  ;;  %v376_v37 = vstv %s472_s11  ;;  %v379_v38 = vstv %s473_s15 }
 0x1e0   :  { %527 = vmatmul.msk.bf16.vlgmr.msrb.gmra.mxu3 %vm93_vm0, %v248_v39  ;;  %528 = vmatmul.msk.bf16.vlgmr.msrb.gmra.mxu0 %vm93_vm0, %v248_v39 }
 0x25d   :  { %v305_v41 = vpop.f32.mrf.mxu0 }
 0x25e   :  { %v306_v53 = vadd.f32 %v305_v41, %v256_v45  ;;  %v377_v41 = vmul.f32 %v376_v37, %v765_v26 }
 0x263   :  { %v291_v44 = vpop.f32.mrf.mxu3 }
 0x264   :  { %v292_v46 = vadd.f32 %v291_v44, %v255_v43 }
 0x265   :  { %v307_v47 = vpop.f32.mrf.mxu0 }
 0x266   :  { %v312_v48 = vmul.f32 %v292_v46, %v292_v46  ;;  %v308_v49 = vadd.f32 %v307_v47, %v256_v45  ;;  %450 = vrot.lane.b32.xlu2 %v292_v46, %s595_s3  ;;  %v310_v1 = vmul.f32 0.5, %v292_v46 }
 0x268   :  { %v314_v50 = vmul.f32 %v312_v48, %v292_v46  ;;  %456 = vrot.lane.b32.xlu1 %v308_v49, %s595_s3 }
 0x26a   :  { %v316_v51 = vmul.f32 0.044715, %v314_v50  ;;  %v378_v50 = vmul.f32 %v376_v37, %v767_v32 }
 0x26b   :  { %v293_v52 = vpop.f32.mrf.mxu3 }
 0x26c   :  { %v318_v54 = vadd.f32 %v316_v51, %v292_v46  ;;  %v294_v55 = vadd.f32 %v293_v52, %v255_v43  ;;  %v385_v43 = vmul.f32 %v384_v40, %v711_v18  ;;  %v386_v52 = vmul.f32 %v384_v40, %v713_v19  ;;  %v563_v18 = vld [vmem:[%s830_s13] ss:$0 sm:$0xff] }
 0x26e   :  { %v313_v56 = vmul.f32 %v294_v55, %v294_v55  ;;  %454 = vrot.lane.b32.xlu0 %v294_v55, %s595_s3  ;;  %452 = vrot.lane.b32.xlu2 %v306_v53, %s595_s3  ;;  %v320_v57 = vmul.f32 0.7978846, %v318_v54  ;;  %v311_v2 = vmul.f32 0.5, %v294_v55 }
 0x270   :  { %v315_v58 = vmul.f32 %v313_v56, %v294_v55  ;;  %572 = vtanh.f32 %v320_v57 }
 0x272   :  { %v317_v59 = vmul.f32 0.044715, %v315_v58 }
 0x274   :  { %v319_v60 = vadd.f32 %v317_v59, %v294_v55 }
 0x276   :  { %v321_v61 = vmul.f32 0.7978846, %v319_v60  ;;  %v573_v62 = vpop.eup %572 }
 0x277   :  { %v324_v63 = vadd.f32 1.0, %v573_v62 }
 0x278   :  { %574 = vtanh.f32 %v321_v61 }
 0x279   :  { %v326_v4 = vmul.f32 %v324_v63, %v310_v1 }
 0x27e   :  { %v575_v0 = vpop.eup %574 }
 0x27f   :  { %v325_v3 = vadd.f32 1.0, %v575_v0 }
 0x281   :  { %v327_v5 = vmul.f32 %v325_v3, %v311_v2 }
 0x283   :  { %v328_v6 = vpack.c.bf16 %v327_v5, %v326_v4 }
 0x285   :  { %533 = vmatmul.msk.bf16.vlgmr.msrb.gmra.mxu1 %vm204_vm1, %v328_v6 }
 0x2c0   :  { %v451_v7 = vpop.permute.xlu2 %450 }
 0x2c8   :  { %v453_v8 = vpop.permute.xlu2 %452 }
 0x2c9   :  { %v458_v9 = vsel %vm439_vm2, %v451_v7, %v453_v8 }
 0x2ca   :  { %462 = vst [vmem:[%s831_s14 + $0x8] sm:$0xff] %v458_v9 }
 0x2da   :  { %v457_v10 = vpop.permute.xlu1 %456 }
 0x2e0   :  { %v455_v11 = vpop.permute.xlu0 %454 }
 0x2e1   :  { %v459_v12 = vsel %vm439_vm2, %v455_v11, %v457_v10 }
 0x2e2   :  { %463 = vst [vmem:[%s831_s14 + $0x20] sm:$0xff] %v459_v12 }
 0x302   :  { %v353_v15 = vpop.f32.mrf.mxu1 }
 0x303   :  { %v354_v16 = vadd.f32 %v562_v13, %v353_v15 }
 0x305   :  { %v360_v20 = vmul.f32 %v354_v16, %v354_v16  ;;  %v358_v35 = vmul.f32 0.5, %v354_v16 }
 0x307   :  { %v362_v21 = vmul.f32 %v360_v20, %v354_v16 }
 0x309   :  { %v364_v22 = vmul.f32 0.044715, %v362_v21 }
 0x30a   :  { %v355_v23 = vpop.f32.mrf.mxu1 }
 0x30b   :  { %v366_v24 = vadd.f32 %v364_v22, %v354_v16  ;;  %v356_v25 = vadd.f32 %v562_v13, %v355_v23 }
 0x30d   :  { %v368_v27 = vmul.f32 0.7978846, %v366_v24  ;;  %v361_v28 = vmul.f32 %v356_v25, %v356_v25  ;;  %v359_v46 = vmul.f32 0.5, %v356_v25 }
 0x30f   :  { %576 = vtanh.f32 %v368_v27  ;;  %v363_v29 = vmul.f32 %v361_v28, %v356_v25 }
 0x311   :  { %v365_v30 = vmul.f32 0.044715, %v363_v29 }
 0x313   :  { %v367_v31 = vadd.f32 %v365_v30, %v356_v25 }
 0x315   :  { %v577_v33 = vpop.eup %576  ;;  %v369_v34 = vmul.f32 0.7978846, %v367_v31 }
 0x316   :  { %v372_v36 = vadd.f32 1.0, %v577_v33 }
 0x317   :  { %578 = vtanh.f32 %v369_v34 }
 0x318   :  { %v374_v39 = vmul.f32 %v372_v36, %v358_v35 }
 0x31a   :  { %v380_v42 = vmul.f32 %v379_v38, %v374_v39 }
 0x31c   :  { %v382_v44 = vadd.f32 %v380_v42, %v377_v41 }
 0x31d   :  { %v579_v45 = vpop.eup %578 }
 0x31e   :  { %v373_v47 = vadd.f32 1.0, %v579_v45  ;;  %v387_v48 = vadd.f32 %v385_v43, %v382_v44 }
 0x320   :  { %v375_v49 = vmul.f32 %v373_v47, %v359_v46 }
 0x322   :  { %v381_v51 = vmul.f32 %v379_v38, %v375_v49 }
 0x324   :  { %v383_v53 = vadd.f32 %v381_v51, %v378_v50 }
 0x326   :  { %v388_v54 = vadd.f32 %v386_v52, %v383_v53 }
 0x328   :  { %v389_v55 = vpack.c.bf16 %v388_v54, %v387_v48 }
 0x32a   :  { %542 = vmatmul.msk.bf16.vlgmr.msrb.gmra.mxu2 %vm93_vm0, %v389_v55 }
 0x3ad   :  { %v422_v26 = vpop.f32.mrf.mxu2 }
 0x3ae   :  { %v423_v56 = vadd.f32 %v563_v18, %v422_v26 }
 0x3b0   :  { %464 = vst [vmem:[%s831_s14 + $0x10] sm:$0xff] %v423_v56 }
 0x3b5   :  { %v424_v57 = vpop.f32.mrf.mxu2 }
 0x3b6   :  { %v425_v32 = vadd.f32 %v563_v18, %v424_v57 }
 0x3b8   :  { %465 = vst [vmem:[%s831_s14 + $0x28] sm:$0xff] %v425_v32 }
 0x3b9   :  { %470 = vsyncpa [#allocation3], 1 }

</bundles_post_ra>
